<compile_context>
chip_gen: v7x
topology: tpu7x:2x2x1
jax: 0.10.0
libtpu: 0.0.40
codegen_flags: <defaults>
</compile_context>

<pallas_src>
import functools

import jax
import jax.numpy as jnp
from jax import lax
from jax.experimental import pallas as pl
from jax.experimental.pallas import tpu as pltpu

KSIZE = 3      # padding=1 preserves T only for kernel_size=3 (as used in FastSpeech2)
LN_EPS = 1e-5  # torch.nn.LayerNorm default


def _round_up(n, m):
    return ((n + m - 1) // m) * m


def _layer_norm(h, gamma, beta):
    m = jnp.mean(h, axis=-1, keepdims=True)
    v = jnp.mean((h - m) ** 2, axis=-1, keepdims=True)
    return (h - m) * lax.rsqrt(v + LN_EPS) * gamma + beta


def predictor_block_kernel(t_real,                         # static: true sequence length
                           x_ref,                          # (TT+4, E) bf16 halo tile
                           w1_ref, b1_ref, g1_ref, be1_ref,
                           w2_ref, b2_ref, g2_ref, be2_ref,
                           wl_ref, bl_ref, alpha_ref,
                           out_ref):                       # (TT, 1) f32
    TT = out_ref.shape[0]
    t0 = pl.program_id(1) * TT          # global index of this tile's first output row

    x = x_ref[...]                                                          # (TT+4, E) bf16

    # ---- Conv1d(E -> H, k=3, pad=1): three shifted taps, bf16 MXU, f32 accumulation.
    # Hidden row j (global t0-1+j) = sum_k x_tile[j+k] @ w1[k]; x's zero padding is
    # already baked into the halo tile by the wrapper.
    h = (jnp.dot(x[0:TT + 2], w1_ref[0], preferred_element_type=jnp.float32)
         + jnp.dot(x[1:TT + 3], w1_ref[1], preferred_element_type=jnp.float32)
         + jnp.dot(x[2:TT + 4], w1_ref[2], preferred_element_type=jnp.float32)
         + b1_ref[...])                                                     # (TT+2, H) f32

    # ---- LayerNorm + ReLU (f32 on the VPU).  Dropout == identity at inference.
    h = jnp.maximum(_layer_norm(h, g1_ref[...], be1_ref[...]), 0.0)

    # Hidden rows whose global index falls outside [0, T) are conv2's zero padding
    # (and the T -> Tpad tail): zero them before the second conv.
    row = t0 - 1 + lax.broadcasted_iota(jnp.int32, (TT + 2, 1), 0)
    h = jnp.where((row >= 0) & (row < t_real), h, 0.0).astype(jnp.bfloat16)

    # ---- Conv1d(H -> H, k=3, pad=1): three shifted taps, bf16 MXU, f32 accumulation.
    h2 = (jnp.dot(h[0:TT],       w2_ref[0], preferred_element_type=jnp.float32)
          + jnp.dot(h[1:TT + 1], w2_ref[1], preferred_element_type=jnp.float32)
          + jnp.dot(h[2:TT + 2], w2_ref[2], preferred_element_type=jnp.float32)
          + b2_ref[...])                                                    # (TT, H) f32

    # ---- LayerNorm + ReLU
    h2 = jnp.maximum(_layer_norm(h2, g2_ref[...], be2_ref[...]), 0.0)

    # ---- Linear(H -> 1) + ReLU, scaled by alpha.
    y = jnp.sum(h2 * wl_ref[...], axis=-1, keepdims=True) + bl_ref[...]     # (TT, 1)
    out_ref[...] = jnp.maximum(y, 0.0) * alpha_ref[...]


def predictor_block(x, params, alpha, *, t_tile=256):
    """x: (B, T, E) float32 -> (B, T, 1) float32 (PredictorBlock forward, eval mode)."""
    B, T, E = x.shape
    H = params["b1"].shape[-1]

    TT = max(8, min(_round_up(t_tile, 8), _round_up(T, 8)))   # sublane-aligned time tile
    NT = int(pl.cdiv(T, TT))
    Tpad = NT * TT

    # Zero-pad time by 2 on each side (covers both conv halos and the T->Tpad tail),
    # then cut overlapping halo tiles: tile t holds xpad[t*TT : t*TT + TT + 4], i.e.
    # the receptive field (through both convs) of output rows [t*TT, t*TT + TT).
    xpad = jnp.pad(x, ((0, 0), (2, Tpad - T + 2), (0, 0)))
    xt = jnp.stack([xpad[:, i * TT:i * TT + TT + 4, :] for i in range(NT)], axis=1)
    xt = xt.astype(jnp.bfloat16)                               # (B, NT, TT+4, E)

    w1 = params["w1"].astype(jnp.bfloat16)                     # (3, E, H)
    w2 = params["w2"].astype(jnp.bfloat16)                     # (3, H, H)
    alpha_arr = jnp.full((1, 1), alpha, jnp.float32)

    p2 = lambda b, t: (0, 0)        # resident params: constant block index -> no re-DMA
    p3 = lambda b, t: (0, 0, 0)

    in_specs = [
        pl.BlockSpec((None, None, TT + 4, E), lambda b, t: (b, t, 0, 0)),
        pl.BlockSpec((KSIZE, E, H), p3),
        pl.BlockSpec((1, H), p2), pl.BlockSpec((1, H), p2), pl.BlockSpec((1, H), p2),
        pl.BlockSpec((KSIZE, H, H), p3),
        pl.BlockSpec((1, H), p2), pl.BlockSpec((1, H), p2), pl.BlockSpec((1, H), p2),
        pl.BlockSpec((1, H), p2),
        pl.BlockSpec((1, 1), p2),
        pl.BlockSpec((1, 1), p2),
    ]
    out_specs = pl.BlockSpec((None, TT, 1), lambda b, t: (b, t, 0))

    flops = 2 * B * Tpad * (KSIZE * E * H + KSIZE * H * H + H)
    bytes_accessed = (xt.size * 2 + (KSIZE * E * H + KSIZE * H * H) * 2
                      + 7 * H * 4 + 2 * 4 + B * Tpad * 4)
    cost = pl.CostEstimate(flops=flops, transcendentals=2 * B * Tpad,
                           bytes_accessed=bytes_accessed)

    out = pl.pallas_call(
        functools.partial(predictor_block_kernel, T),
        out_shape=jax.ShapeDtypeStruct((B, Tpad, 1), jnp.float32),
        grid=(B, NT),
        in_specs=in_specs,
        out_specs=out_specs,
        compiler_params=pltpu.CompilerParams(
            dimension_semantics=("parallel", "parallel"),
            vmem_limit_bytes=32 * 1024 * 1024),
        cost_estimate=cost,
    )(xt, w1,
      params["b1"], params["g1"], params["be1"],
      w2, params["b2"], params["g2"], params["be2"],
      params["wl"], params["bl"], alpha_arr)
    return out[:, :T, :]


def init_params(key, emb_dim, hidden_dim):
    ks = jax.random.split(key, 10)
    s = 0.1
    return dict(
        w1=jax.random.normal(ks[0], (KSIZE, emb_dim, hidden_dim), jnp.float32) * s,
        b1=jax.random.normal(ks[1], (1, hidden_dim), jnp.float32) * s,
        g1=1.0 + jax.random.normal(ks[2], (1, hidden_dim), jnp.float32) * s,
        be1=jax.random.normal(ks[3], (1, hidden_dim), jnp.float32) * s,
        w2=jax.random.normal(ks[4], (KSIZE, hidden_dim, hidden_dim), jnp.float32) * s,
        b2=jax.random.normal(ks[5], (1, hidden_dim), jnp.float32) * s,
        g2=1.0 + jax.random.normal(ks[6], (1, hidden_dim), jnp.float32) * s,
        be2=jax.random.normal(ks[7], (1, hidden_dim), jnp.float32) * s,
        wl=jax.random.normal(ks[8], (1, hidden_dim), jnp.float32) * s,  # nn.Linear (1, H)
        bl=jax.random.normal(ks[9], (1, 1), jnp.float32) * s,
    )


def reference_forward(x, p, alpha):
    """Pure-JAX f32 reference mirroring the PyTorch forward (eval mode)."""
    def conv1d(h, w, b):
        _, T, _ = h.shape
        hp = jnp.pad(h, ((0, 0), (1, 1), (0, 0)))
        out = sum(jnp.einsum("bti,io->bto", hp[:, k:k + T, :], w[k]) for k in range(KSIZE))
        return out + b

    def ln(h, g, b):
        m = h.mean(-1, keepdims=True)
        v = ((h - m) ** 2).mean(-1, keepdims=True)
        return (h - m) / jnp.sqrt(v + LN_EPS) * g + b

    h = jax.nn.relu(ln(conv1d(x, p["w1"], p["b1"]), p["g1"], p["be1"]))
    h = jax.nn.relu(ln(conv1d(h, p["w2"], p["b2"]), p["g2"], p["be2"]))
    y = jax.nn.relu(jnp.sum(h * p["wl"], -1, keepdims=True) + p["bl"]) * alpha
    return y


if __name__ == "__main__":
    key = jax.random.PRNGKey(0)
    configs = [  # (B, T, emb, hidden, t_tile, alpha)
        (2, 16, 32, 32, 8, 1.5),    # T multiple of the tile: 2 time-tiles, halo path used
        (2, 13, 32, 48, 8, 0.75),   # ragged T: tail-tile masking path used
    ]
    for i, (B, T, EMB, HID, TT, alpha) in enumerate(configs):
        kx, kp, key = jax.random.split(key, 3)
        x = jax.random.normal(kx, (B, T, EMB), jnp.float32)
        params = init_params(kp, EMB, HID)

        out = jax.block_until_ready(predictor_block(x, params, alpha, t_tile=TT))
        ref = reference_forward(x, params, alpha)

        assert out.shape == (B, T, 1), out.shape
        # bf16 MXU operands vs an all-f32 reference -> bf16-level tolerance.
        if not jnp.allclose(out, ref, rtol=5e-2, atol=5e-2):
            err = float(jnp.max(jnp.abs(out - ref)))
            raise AssertionError(f"config {i}: Pallas kernel mismatch (max abs err {err:.3e})")
    print("KERNEL_OK")
</pallas_src>

<mosaic_0001>
module attributes {stable_mosaic.version = 11 : i64} {
  func.func @predictor_block_kernel(%arg0: i32, %arg1: i32, %arg2: memref<1x1x12x32xbf16, #tpu.memory_space<vmem>>, %arg3: memref<3x32x32xbf16, #tpu.memory_space<vmem>>, %arg4: memref<1x32xf32, #tpu.memory_space<vmem>>, %arg5: memref<1x32xf32, #tpu.memory_space<vmem>>, %arg6: memref<1x32xf32, #tpu.memory_space<vmem>>, %arg7: memref<3x32x32xbf16, #tpu.memory_space<vmem>>, %arg8: memref<1x32xf32, #tpu.memory_space<vmem>>, %arg9: memref<1x32xf32, #tpu.memory_space<vmem>>, %arg10: memref<1x32xf32, #tpu.memory_space<vmem>>, %arg11: memref<1x32xf32, #tpu.memory_space<vmem>>, %arg12: memref<1x1xf32, #tpu.memory_space<vmem>>, %arg13: memref<1x1xf32, #tpu.memory_space<vmem>>, %arg14: memref<1x8x1xf32, #tpu.memory_space<vmem>>) attributes {dimension_semantics = [#tpu.dimension_semantics<parallel>, #tpu.dimension_semantics<parallel>], iteration_bounds = array<i64: 2, 2>, scalar_prefetch = 0 : i64, scratch_operands = 0 : i64, tpu.core_type = #tpu.core_type<tc>, window_params = [{transform_indices = @transform_0, window_bounds = array<i64: 1, 1, 12, 32>}, {pipeline_mode = #tpu.pipeline_mode<synchronous>, transform_indices = @transform_1, window_bounds = array<i64: 3, 32, 32>}, {pipeline_mode = #tpu.pipeline_mode<synchronous>, transform_indices = @transform_2, window_bounds = array<i64: 1, 32>}, {pipeline_mode = #tpu.pipeline_mode<synchronous>, transform_indices = @transform_3, window_bounds = array<i64: 1, 32>}, {pipeline_mode = #tpu.pipeline_mode<synchronous>, transform_indices = @transform_4, window_bounds = array<i64: 1, 32>}, {pipeline_mode = #tpu.pipeline_mode<synchronous>, transform_indices = @transform_5, window_bounds = array<i64: 3, 32, 32>}, {pipeline_mode = #tpu.pipeline_mode<synchronous>, transform_indices = @transform_6, window_bounds = array<i64: 1, 32>}, {pipeline_mode = #tpu.pipeline_mode<synchronous>, transform_indices = @transform_7, window_bounds = array<i64: 1, 32>}, {pipeline_mode = #tpu.pipeline_mode<synchronous>, transform_indices = @transform_8, window_bounds = array<i64: 1, 32>}, {pipeline_mode = #tpu.pipeline_mode<synchronous>, transform_indices = @transform_9, window_bounds = array<i64: 1, 32>}, {pipeline_mode = #tpu.pipeline_mode<synchronous>, transform_indices = @transform_10, window_bounds = array<i64: 1, 1>}, {pipeline_mode = #tpu.pipeline_mode<synchronous>, transform_indices = @transform_11, window_bounds = array<i64: 1, 1>}, {transform_indices = @transform_12, window_bounds = array<i64: 1, 8, 1>}]} {
    %c8_i32 = arith.constant 8 : i32
    %0 = arith.muli %arg1, %c8_i32 : i32
    %c0 = arith.constant 0 : index
    %c0_0 = arith.constant 0 : index
    %c0_1 = arith.constant 0 : index
    %c0_2 = arith.constant 0 : index
    %1 = vector.load %arg2[%c0, %c0_0, %c0_1, %c0_2] : memref<1x1x12x32xbf16, #tpu.memory_space<vmem>>, vector<1x1x12x32xbf16>
    %2 = vector.shape_cast %1 : vector<1x1x12x32xbf16> to vector<12x32xbf16>
    %3 = vector.extract_strided_slice %2 {offsets = [0, 0], sizes = [10, 32], strides = [1, 1]} : vector<12x32xbf16> to vector<10x32xbf16>
    %c0_3 = arith.constant 0 : index
    %c0_4 = arith.constant 0 : index
    %c0_5 = arith.constant 0 : index
    %4 = vector.load %arg3[%c0_3, %c0_4, %c0_5] : memref<3x32x32xbf16, #tpu.memory_space<vmem>>, vector<1x32x32xbf16>
    %5 = vector.shape_cast %4 : vector<1x32x32xbf16> to vector<32x32xbf16>
    %cst = arith.constant dense<0.000000e+00> : vector<10x32xf32>
    %6 = tpu.matmul %3, %5, %cst {dimension_numbers = #tpu.dot_dimension_numbers<[1], [0], [0], [1], [0, 0, 1, 1], [], []>} : vector<10x32xbf16>, vector<32x32xbf16>, vector<10x32xf32> -> vector<10x32xf32>
    %7 = vector.extract_strided_slice %2 {offsets = [1, 0], sizes = [10, 32], strides = [1, 1]} : vector<12x32xbf16> to vector<10x32xbf16>
    %c1 = arith.constant 1 : index
    %c0_6 = arith.constant 0 : index
    %c0_7 = arith.constant 0 : index
    %8 = vector.load %arg3[%c1, %c0_6, %c0_7] : memref<3x32x32xbf16, #tpu.memory_space<vmem>>, vector<1x32x32xbf16>
    %9 = vector.shape_cast %8 : vector<1x32x32xbf16> to vector<32x32xbf16>
    %cst_8 = arith.constant dense<0.000000e+00> : vector<10x32xf32>
    %10 = tpu.matmul %7, %9, %cst_8 {dimension_numbers = #tpu.dot_dimension_numbers<[1], [0], [0], [1], [0, 0, 1, 1], [], []>} : vector<10x32xbf16>, vector<32x32xbf16>, vector<10x32xf32> -> vector<10x32xf32>
    %11 = arith.addf %6, %10 : vector<10x32xf32>
    %12 = vector.extract_strided_slice %2 {offsets = [2, 0], sizes = [10, 32], strides = [1, 1]} : vector<12x32xbf16> to vector<10x32xbf16>
    %c2 = arith.constant 2 : index
    %c0_9 = arith.constant 0 : index
    %c0_10 = arith.constant 0 : index
    %13 = vector.load %arg3[%c2, %c0_9, %c0_10] : memref<3x32x32xbf16, #tpu.memory_space<vmem>>, vector<1x32x32xbf16>
    %14 = vector.shape_cast %13 : vector<1x32x32xbf16> to vector<32x32xbf16>
    %cst_11 = arith.constant dense<0.000000e+00> : vector<10x32xf32>
    %15 = tpu.matmul %12, %14, %cst_11 {dimension_numbers = #tpu.dot_dimension_numbers<[1], [0], [0], [1], [0, 0, 1, 1], [], []>} : vector<10x32xbf16>, vector<32x32xbf16>, vector<10x32xf32> -> vector<10x32xf32>
    %16 = arith.addf %11, %15 : vector<10x32xf32>
    %c0_12 = arith.constant 0 : index
    %c0_13 = arith.constant 0 : index
    %17 = vector.load %arg4[%c0_12, %c0_13] : memref<1x32xf32, #tpu.memory_space<vmem>>, vector<1x32xf32>
    %18 = vector.broadcast %17 : vector<1x32xf32> to vector<10x32xf32>
    %19 = arith.addf %16, %18 : vector<10x32xf32>
    %c0_14 = arith.constant 0 : index
    %c0_15 = arith.constant 0 : index
    %20 = vector.load %arg5[%c0_14, %c0_15] : memref<1x32xf32, #tpu.memory_space<vmem>>, vector<1x32xf32>
    %c0_16 = arith.constant 0 : index
    %c0_17 = arith.constant 0 : index
    %21 = vector.load %arg6[%c0_16, %c0_17] : memref<1x32xf32, #tpu.memory_space<vmem>>, vector<1x32xf32>
    %cst_18 = arith.constant dense<0.000000e+00> : vector<10xf32>
    %22 = vector.multi_reduction <add>, %19, %cst_18 [1] : vector<10x32xf32> to vector<10xf32>
    %23 = vector.shape_cast %22 : vector<10xf32> to vector<10x1xf32>
    %cst_19 = arith.constant 3.200000e+01 : f32
    %24 = vector.broadcast %cst_19 : f32 to vector<10x1xf32>
    %25 = arith.divf %23, %24 : vector<10x1xf32>
    %26 = vector.broadcast %25 : vector<10x1xf32> to vector<10x32xf32>
    %27 = arith.subf %19, %26 : vector<10x32xf32>
    %28 = arith.mulf %27, %27 : vector<10x32xf32>
    %cst_20 = arith.constant dense<0.000000e+00> : vector<10xf32>
    %29 = vector.multi_reduction <add>, %28, %cst_20 [1] : vector<10x32xf32> to vector<10xf32>
    %30 = vector.shape_cast %29 : vector<10xf32> to vector<10x1xf32>
    %cst_21 = arith.constant 3.200000e+01 : f32
    %31 = vector.broadcast %cst_21 : f32 to vector<10x1xf32>
    %32 = arith.divf %30, %31 : vector<10x1xf32>
    %33 = vector.broadcast %25 : vector<10x1xf32> to vector<10x32xf32>
    %34 = arith.subf %19, %33 : vector<10x32xf32>
    %cst_22 = arith.constant 9.99999974E-6 : f32
    %35 = vector.broadcast %cst_22 : f32 to vector<10x1xf32>
    %36 = arith.addf %32, %35 : vector<10x1xf32>
    %37 = math.rsqrt %36 : vector<10x1xf32>
    %38 = vector.broadcast %37 : vector<10x1xf32> to vector<10x32xf32>
    %39 = arith.mulf %34, %38 : vector<10x32xf32>
    %40 = vector.broadcast %20 : vector<1x32xf32> to vector<10x32xf32>
    %41 = arith.mulf %39, %40 : vector<10x32xf32>
    %42 = vector.broadcast %21 : vector<1x32xf32> to vector<10x32xf32>
    %43 = arith.addf %41, %42 : vector<10x32xf32>
    %cst_23 = arith.constant 0.000000e+00 : f32
    %44 = vector.broadcast %cst_23 : f32 to vector<10x32xf32>
    %45 = arith.maximumf %43, %44 : vector<10x32xf32>
    %c1_i32 = arith.constant 1 : i32
    %46 = arith.subi %0, %c1_i32 : i32
    %47 = tpu.iota {dimensions = array<i32: 0>} : vector<10x1xi32>
    %48 = vector.broadcast %46 : i32 to vector<10x1xi32>
    %49 = arith.addi %48, %47 : vector<10x1xi32>
    %c0_i32 = arith.constant 0 : i32
    %50 = vector.broadcast %c0_i32 : i32 to vector<10x1xi32>
    %51 = arith.cmpi sge, %49, %50 : vector<10x1xi32>
    %c16_i32 = arith.constant 16 : i32
    %52 = vector.broadcast %c16_i32 : i32 to vector<10x1xi32>
    %53 = arith.cmpi slt, %49, %52 : vector<10x1xi32>
    %54 = arith.andi %51, %53 : vector<10x1xi1>
    %cst_24 = arith.constant 0.000000e+00 : f32
    %55 = vector.shape_cast %54 : vector<10x1xi1> to vector<10x1xi1>
    %56 = vector.broadcast %55 : vector<10x1xi1> to vector<10x32xi1>
    %57 = vector.broadcast %cst_24 : f32 to vector<10x32xf32>
    %58 = arith.select %56, %45, %57 : vector<10x32xi1>, vector<10x32xf32>
    %59 = arith.truncf %58 : vector<10x32xf32> to vector<10x32xbf16>
    %60 = vector.extract_strided_slice %59 {offsets = [0, 0], sizes = [8, 32], strides = [1, 1]} : vector<10x32xbf16> to vector<8x32xbf16>
    %c0_25 = arith.constant 0 : index
    %c0_26 = arith.constant 0 : index
    %c0_27 = arith.constant 0 : index
    %61 = vector.load %arg7[%c0_25, %c0_26, %c0_27] : memref<3x32x32xbf16, #tpu.memory_space<vmem>>, vector<1x32x32xbf16>
    %62 = vector.shape_cast %61 : vector<1x32x32xbf16> to vector<32x32xbf16>
    %cst_28 = arith.constant dense<0.000000e+00> : vector<8x32xf32>
    %63 = tpu.matmul %60, %62, %cst_28 {dimension_numbers = #tpu.dot_dimension_numbers<[1], [0], [0], [1], [0, 0, 1, 1], [], []>} : vector<8x32xbf16>, vector<32x32xbf16>, vector<8x32xf32> -> vector<8x32xf32>
    %64 = vector.extract_strided_slice %59 {offsets = [1, 0], sizes = [8, 32], strides = [1, 1]} : vector<10x32xbf16> to vector<8x32xbf16>
    %c1_29 = arith.constant 1 : index
    %c0_30 = arith.constant 0 : index
    %c0_31 = arith.constant 0 : index
    %65 = vector.load %arg7[%c1_29, %c0_30, %c0_31] : memref<3x32x32xbf16, #tpu.memory_space<vmem>>, vector<1x32x32xbf16>
    %66 = vector.shape_cast %65 : vector<1x32x32xbf16> to vector<32x32xbf16>
    %cst_32 = arith.constant dense<0.000000e+00> : vector<8x32xf32>
    %67 = tpu.matmul %64, %66, %cst_32 {dimension_numbers = #tpu.dot_dimension_numbers<[1], [0], [0], [1], [0, 0, 1, 1], [], []>} : vector<8x32xbf16>, vector<32x32xbf16>, vector<8x32xf32> -> vector<8x32xf32>
    %68 = arith.addf %63, %67 : vector<8x32xf32>
    %69 = vector.extract_strided_slice %59 {offsets = [2, 0], sizes = [8, 32], strides = [1, 1]} : vector<10x32xbf16> to vector<8x32xbf16>
    %c2_33 = arith.constant 2 : index
    %c0_34 = arith.constant 0 : index
    %c0_35 = arith.constant 0 : index
    %70 = vector.load %arg7[%c2_33, %c0_34, %c0_35] : memref<3x32x32xbf16, #tpu.memory_space<vmem>>, vector<1x32x32xbf16>
    %71 = vector.shape_cast %70 : vector<1x32x32xbf16> to vector<32x32xbf16>
    %cst_36 = arith.constant dense<0.000000e+00> : vector<8x32xf32>
    %72 = tpu.matmul %69, %71, %cst_36 {dimension_numbers = #tpu.dot_dimension_numbers<[1], [0], [0], [1], [0, 0, 1, 1], [], []>} : vector<8x32xbf16>, vector<32x32xbf16>, vector<8x32xf32> -> vector<8x32xf32>
    %73 = arith.addf %68, %72 : vector<8x32xf32>
    %c0_37 = arith.constant 0 : index
    %c0_38 = arith.constant 0 : index
    %74 = vector.load %arg8[%c0_37, %c0_38] : memref<1x32xf32, #tpu.memory_space<vmem>>, vector<1x32xf32>
    %75 = vector.broadcast %74 : vector<1x32xf32> to vector<8x32xf32>
    %76 = arith.addf %73, %75 : vector<8x32xf32>
    %c0_39 = arith.constant 0 : index
    %c0_40 = arith.constant 0 : index
    %77 = vector.load %arg9[%c0_39, %c0_40] : memref<1x32xf32, #tpu.memory_space<vmem>>, vector<1x32xf32>
    %c0_41 = arith.constant 0 : index
    %c0_42 = arith.constant 0 : index
    %78 = vector.load %arg10[%c0_41, %c0_42] : memref<1x32xf32, #tpu.memory_space<vmem>>, vector<1x32xf32>
    %cst_43 = arith.constant dense<0.000000e+00> : vector<8xf32>
    %79 = vector.multi_reduction <add>, %76, %cst_43 [1] : vector<8x32xf32> to vector<8xf32>
    %80 = vector.shape_cast %79 : vector<8xf32> to vector<8x1xf32>
    %cst_44 = arith.constant 3.200000e+01 : f32
    %81 = vector.broadcast %cst_44 : f32 to vector<8x1xf32>
    %82 = arith.divf %80, %81 : vector<8x1xf32>
    %83 = vector.broadcast %82 : vector<8x1xf32> to vector<8x32xf32>
    %84 = arith.subf %76, %83 : vector<8x32xf32>
    %85 = arith.mulf %84, %84 : vector<8x32xf32>
    %cst_45 = arith.constant dense<0.000000e+00> : vector<8xf32>
    %86 = vector.multi_reduction <add>, %85, %cst_45 [1] : vector<8x32xf32> to vector<8xf32>
    %87 = vector.shape_cast %86 : vector<8xf32> to vector<8x1xf32>
    %cst_46 = arith.constant 3.200000e+01 : f32
    %88 = vector.broadcast %cst_46 : f32 to vector<8x1xf32>
    %89 = arith.divf %87, %88 : vector<8x1xf32>
    %90 = vector.broadcast %82 : vector<8x1xf32> to vector<8x32xf32>
    %91 = arith.subf %76, %90 : vector<8x32xf32>
    %cst_47 = arith.constant 9.99999974E-6 : f32
    %92 = vector.broadcast %cst_47 : f32 to vector<8x1xf32>
    %93 = arith.addf %89, %92 : vector<8x1xf32>
    %94 = math.rsqrt %93 : vector<8x1xf32>
    %95 = vector.broadcast %94 : vector<8x1xf32> to vector<8x32xf32>
    %96 = arith.mulf %91, %95 : vector<8x32xf32>
    %97 = vector.broadcast %77 : vector<1x32xf32> to vector<8x32xf32>
    %98 = arith.mulf %96, %97 : vector<8x32xf32>
    %99 = vector.broadcast %78 : vector<1x32xf32> to vector<8x32xf32>
    %100 = arith.addf %98, %99 : vector<8x32xf32>
    %cst_48 = arith.constant 0.000000e+00 : f32
    %101 = vector.broadcast %cst_48 : f32 to vector<8x32xf32>
    %102 = arith.maximumf %100, %101 : vector<8x32xf32>
    %c0_49 = arith.constant 0 : index
    %c0_50 = arith.constant 0 : index
    %103 = vector.load %arg11[%c0_49, %c0_50] : memref<1x32xf32, #tpu.memory_space<vmem>>, vector<1x32xf32>
    %104 = vector.broadcast %103 : vector<1x32xf32> to vector<8x32xf32>
    %105 = arith.mulf %102, %104 : vector<8x32xf32>
    %cst_51 = arith.constant dense<0.000000e+00> : vector<8xf32>
    %106 = vector.multi_reduction <add>, %105, %cst_51 [1] : vector<8x32xf32> to vector<8xf32>
    %107 = vector.shape_cast %106 : vector<8xf32> to vector<8x1xf32>
    %c0_52 = arith.constant 0 : index
    %c0_53 = arith.constant 0 : index
    %108 = vector.load %arg12[%c0_52, %c0_53] : memref<1x1xf32, #tpu.memory_space<vmem>>, vector<1x1xf32>
    %109 = vector.broadcast %108 : vector<1x1xf32> to vector<8x1xf32>
    %110 = arith.addf %107, %109 : vector<8x1xf32>
    %cst_54 = arith.constant 0.000000e+00 : f32
    %111 = vector.broadcast %cst_54 : f32 to vector<8x1xf32>
    %112 = arith.maximumf %110, %111 : vector<8x1xf32>
    %c0_55 = arith.constant 0 : index
    %c0_56 = arith.constant 0 : index
    %113 = vector.load %arg13[%c0_55, %c0_56] : memref<1x1xf32, #tpu.memory_space<vmem>>, vector<1x1xf32>
    %114 = vector.broadcast %113 : vector<1x1xf32> to vector<8x1xf32>
    %115 = arith.mulf %112, %114 : vector<8x1xf32>
    %c0_57 = arith.constant 0 : index
    %c0_58 = arith.constant 0 : index
    %c0_59 = arith.constant 0 : index
    %116 = vector.load %arg14[%c0_57, %c0_58, %c0_59] : memref<1x8x1xf32, #tpu.memory_space<vmem>>, vector<1x8x1xf32>
    %117 = vector.shape_cast %116 : vector<1x8x1xf32> to vector<8x1xf32>
    %118 = vector.shape_cast %115 : vector<8x1xf32> to vector<1x8x1xf32>
    tpu.vector_store %arg14[%c0_57, %c0_58, %c0_59], %118 {strides = array<i32>} : memref<1x8x1xf32, #tpu.memory_space<vmem>>, vector<1x8x1xf32>,
    return
  }
  func.func @transform_0(%arg0: i32, %arg1: i32) -> (i32, i32, i32, i32) {
    %c0_i32 = arith.constant 0 : i32
    %c0_i32_0 = arith.constant 0 : i32
    %c0_i32_1 = arith.constant 0 : i32
    return %arg0, %arg1, %c0_i32, %c0_i32_0 : i32, i32, i32, i32
  }
  func.func @transform_1(%arg0: i32, %arg1: i32) -> (i32, i32, i32) {
    %c0_i32 = arith.constant 0 : i32
    %c0_i32_0 = arith.constant 0 : i32
    %c0_i32_1 = arith.constant 0 : i32
    %c0_i32_2 = arith.constant 0 : i32
    return %c0_i32, %c0_i32_0, %c0_i32_1 : i32, i32, i32
  }
  func.func @transform_2(%arg0: i32, %arg1: i32) -> (i32, i32) {
    %c0_i32 = arith.constant 0 : i32
    %c0_i32_0 = arith.constant 0 : i32
    %c0_i32_1 = arith.constant 0 : i32
    return %c0_i32, %c0_i32_0 : i32, i32
  }
  func.func @transform_3(%arg0: i32, %arg1: i32) -> (i32, i32) {
    %c0_i32 = arith.constant 0 : i32
    %c0_i32_0 = arith.constant 0 : i32
    %c0_i32_1 = arith.constant 0 : i32
    return %c0_i32, %c0_i32_0 : i32, i32
  }
  func.func @transform_4(%arg0: i32, %arg1: i32) -> (i32, i32) {
    %c0_i32 = arith.constant 0 : i32
    %c0_i32_0 = arith.constant 0 : i32
    %c0_i32_1 = arith.constant 0 : i32
    return %c0_i32, %c0_i32_0 : i32, i32
  }
  func.func @transform_5(%arg0: i32, %arg1: i32) -> (i32, i32, i32) {
    %c0_i32 = arith.constant 0 : i32
    %c0_i32_0 = arith.constant 0 : i32
    %c0_i32_1 = arith.constant 0 : i32
    %c0_i32_2 = arith.constant 0 : i32
    return %c0_i32, %c0_i32_0, %c0_i32_1 : i32, i32, i32
  }
  func.func @transform_6(%arg0: i32, %arg1: i32) -> (i32, i32) {
    %c0_i32 = arith.constant 0 : i32
    %c0_i32_0 = arith.constant 0 : i32
    %c0_i32_1 = arith.constant 0 : i32
    return %c0_i32, %c0_i32_0 : i32, i32
  }
  func.func @transform_7(%arg0: i32, %arg1: i32) -> (i32, i32) {
    %c0_i32 = arith.constant 0 : i32
    %c0_i32_0 = arith.constant 0 : i32
    %c0_i32_1 = arith.constant 0 : i32
    return %c0_i32, %c0_i32_0 : i32, i32
  }
  func.func @transform_8(%arg0: i32, %arg1: i32) -> (i32, i32) {
    %c0_i32 = arith.constant 0 : i32
    %c0_i32_0 = arith.constant 0 : i32
    %c0_i32_1 = arith.constant 0 : i32
    return %c0_i32, %c0_i32_0 : i32, i32
  }
  func.func @transform_9(%arg0: i32, %arg1: i32) -> (i32, i32) {
    %c0_i32 = arith.constant 0 : i32
    %c0_i32_0 = arith.constant 0 : i32
    %c0_i32_1 = arith.constant 0 : i32
    return %c0_i32, %c0_i32_0 : i32, i32
  }
  func.func @transform_10(%arg0: i32, %arg1: i32) -> (i32, i32) {
    %c0_i32 = arith.constant 0 : i32
    %c0_i32_0 = arith.constant 0 : i32
    %c0_i32_1 = arith.constant 0 : i32
    return %c0_i32, %c0_i32_0 : i32, i32
  }
  func.func @transform_11(%arg0: i32, %arg1: i32) -> (i32, i32) {
    %c0_i32 = arith.constant 0 : i32
    %c0_i32_0 = arith.constant 0 : i32
    %c0_i32_1 = arith.constant 0 : i32
    return %c0_i32, %c0_i32_0 : i32, i32
  }
  func.func @transform_12(%arg0: i32, %arg1: i32) -> (i32, i32, i32) {
    %c0_i32 = arith.constant 0 : i32
    %c0_i32_0 = arith.constant 0 : i32
    return %arg0, %arg1, %c0_i32 : i32, i32, i32
  }
}

</mosaic_0001>

<bundles_post_ra>
// kernel: tpu_custom_call.1
= control target key start
LH: loop header
LB: loop body
LE: loop exit
PB: predicated region body
PF: predicated region fallthrough
CT: control target
= control target key end

     0   :  { %s1624_s0 = inlined_call_operand.vmem [shape: bf16[2,2,12,32], index: 0, kind: input, shape index: {}]   ;;  %s1625_s1 = inlined_call_operand.vmem [shape: bf16[3,32,32], index: 1, kind: input, shape index: {}]   ;;  %s1626_s2 = inlined_call_operand.vmem [shape: f32[1,32], index: 2, kind: input, shape index: {}]   ;;  %s1627_s3 = inlined_call_operand.vmem [shape: f32[1,32], index: 3, kind: input, shape index: {}]   ;;  %s1628_s4 = inlined_call_operand.vmem [shape: f32[1,32], index: 4, kind: input, shape index: {}]   ;;  %s1629_s5 = inlined_call_operand.hbm [shape: bf16[3,32,32], index: 5, kind: input, shape index: {}]   ;;  %s1630_s6 = inlined_call_operand.vmem [shape: f32[1,32], index: 6, kind: input, shape index: {}]   ;;  %s1631_s7 = inlined_call_operand.vmem [shape: f32[1,32], index: 7, kind: input, shape index: {}]   ;;  %s1632_s8 = inlined_call_operand.vmem [shape: f32[1,32], index: 8, kind: input, shape index: {}]   ;;  %s1633_s9 = inlined_call_operand.vmem [shape: f32[1,32], index: 9, kind: input, shape index: {}]   ;;  %s1634_s10 = inlined_call_operand.<no memory space> [shape: f32[1,1], index: 10, kind: input, shape index: {}]   ;;  %s1635_s12 = inlined_call_operand.vmem [shape: f32[2,16,1], index: 12, kind: output, shape index: {}]   ;;  %s1636_s11 = inlined_call_operand.<no memory space> [shape: f32[1,1], index: 11, kind: input, shape index: {}]  }
   0x1   :  { %1640 = sst [smem:[#allocation7_spill]] %s1629_s5  ;;  %v17_v0 = vstv %s1634_s10  ;;  %v19_v1 = vstv %s1636_s11 }
   0x2   :  { %18 = vst [vmem:[#allocation2] sm:$0x1] %v17_v0  ;;  %20 = vst [vmem:[#allocation3] sm:$0x1] %v19_v1 }
   0x3   :  { %21 = vsyncpa [#allocation5], 0  ;;  %s1443_s25 = smov 0   ;;  %s1445_s26 = smov 0  }
   0x4   :  { %s1447_s27 = smov 0   ;;  %s1449_s28 = smov 0  }
   0x5   :  { %s1451_s29 = smov 0  }
   0x6 LB: > { %s1103_s10 = sadd.s32 4294967295, %s1365_s29   ;;  %s36_s11 = sadd.s32 1, %s1357_s27  ;;  %s1365_s29 = sphi %s1451_s29, %s27_s29   ;;  %s1361_s28 = sphi %s1449_s28, %s1650_s28   ;;  %s1357_s27 = sphi %s1447_s27, %s1649_s27   ;;  %s1353_s26 = sphi %s1445_s26, %s1648_s26   ;;  %s1349_s25 = sphi %s1443_s25, %s1647_s25  }
   0x7   : > { %p37_p0 = scmp.ge.s32.totalorder %s36_s11, 2  ;;  %s39_s30 = sadd.s32 1, %s1361_s28 }
   0x8   : > { %p1105_p1 = scmp.ge.s32.totalorder %s1365_s29, 1  ;;  %p331_p2 = scmp.lt.s32.totalorder %s1365_s29, 5 }
   0x9   : > { %s1652_s11 = smov (%p37_p0, %s36_s11), 0  ;;  %s1654_s30 = smov (!%p37_p0, %s39_s30), %s1361_s28 }
   0xa   : > { %p1476_p3 = pnand %p1105_p1, %p331_p2  ;;  %p41_p4 = scmp.ge.s32.totalorder %s1654_s30, 2 }
   0xb   : > { %p1480_p5 = scmp.eq.s32.totalorder %s1103_s10, 0  ;;  %s1367_s15 = smov [#allocation4]  }
   0xc   : > { %s1641_s13 = scalar_select %p1476_p3, 1, 0 }
   0xd   : > { %s1642_s14 = scalar_select %p1480_p5, 1, 0 }
   0xe   : > { %p1225_p6 = pneg %p1476_p3  ;;  %s1656_s30 = smov (%p41_p4, %s1654_s30), 0 }
   0xf   : > { %s355_s16 = sshll.u32 %s1367_s15, 4  ;;  %s1644_s5 = sld [smem:[#allocation7_spill]]  ;;  %s356_s16 = int_to_ptr.vmem [resolvable:$true] %s355_s16 }
  0x10   : > { %p1490_p7 = pnand %p1480_p5, %p1225_p6 }
  0x12   : > { %p1297_p9 = pneg %p1490_p7 }
  0x15   : > { %s1295_s20 = scalar_lea.hbm %s1644_s5, 768 }
  0x16   : > { %p1296_p8 = scmp.ne.s32.totalorder %s1644_s5, %s1295_s20  ;;  %p1302_p12 = scmp.lt.u32.totalorder %s1295_s20, %s1644_s5 }
  0x18   : > { %p1298_p10 = pnand %p1297_p9, %p1296_p8 }
  0x1a   : > { %p1299_p11 = pneg %p1298_p10 }
  0x1c   : > { %p1304_p13 = pnand %p1302_p12, %p1299_p11 }
  0x1e   : > { %1307 = shalt.err (!%p1304_p13)
}
  0x1f   : > { %s1308_s10 = scalar_lea.vmem %s356_s16, 768  ;;  %p1316_p4 = scmp.lt.s32.totalorder %s356_s16, %s356_s16 }
  0x20   : > { %p1309_p0 = scmp.ne.s32.totalorder %s356_s16, %s1308_s10  ;;  %p1317_p6 = scmp.lt.s32.totalorder %s1308_s10, %s1308_s10 }
  0x22   : > { %p1311_p1 = pnand %p1309_p0, %p1297_p9  ;;  %p1318_p5 = por %p1317_p6, %p1316_p4 }
  0x24   : > { %p1312_p2 = pneg %p1311_p1 }
  0x26   : > { %p1319_p3 = pnand %p1318_p5, %p1312_p2 }
  0x28   : > { %1322 = shalt.err (!%p1319_p3)
}
  0x29   : > { %s1368_s15 = smov 64   ;;  %s1369_s18 = smov 4  }
  0x2a   : > { %1228 = dma.hbm_to_vmem [thread:$0]  (!%p1490_p7), %s1644_s5, 768, %s356_s16, [#allocation5], %s1368_s15, %s1368_s15, %s1369_s18  }
  0x2b   : > { %p1645_p8 = scmp.ne.s32.totalorder %s1641_s13, 0 }
  0x2c   : > { %p1646_p10 = scmp.ne.s32.totalorder (!%p1645_p8), %s1642_s14, 0 }
  0x2d   : > { %401 = sbr.rel (%p1645_p8) target bundleno = 1312 (0x520), region = 68 }
  0x34   : > { %1344 = dma.done.wait (%p1646_p10), [#allocation5], 768  }
  0x35   : > { %1346 = vsyncadd (%p1646_p10), [#allocation5], 4294966528  ;;  %p450_p3 = scmp.lt.s32.totalorder %s1353_s26, 1  ;;  %p452_p5 = scmp.lt.s32.totalorder %s1349_s25, 1  ;;  %v1370_v2 = vmov 0.0   ;;  %vm1371_vm0 = vmmov 0   ;;  %v726_v56 = vlaneseq }
  0x36   : > { %1173 = vmatprep.subr.bf16.mxu0 %v1370_v2  ;;  %1181 = vmatprep.subr.bf16.mxu1 %v1370_v2  ;;  %v1276_v3 = vld [vmem:[%s1625_s1 + $0x10] sm:$0xff]   ;;  %v1277_v4 = vld [vmem:[%s1625_s1] sm:$0xff]   ;;  %v1278_v5 = vld [vmem:[%s1625_s1 + $0x18] sm:$0xff]   ;;  %vm504_vm1 = vcmask 261120   ;;  %vm682_vm2 = vcmask 254976   ;;  %s1115_s10 = sshll.u32 %s1349_s25, 3 }
  0x37   : > { %1177 = vmatprep.mubr.msk.bf16.mxu0 %vm1371_vm0, %v1370_v2  ;;  %1185 = vmatprep.mubr.msk.bf16.mxu1 %vm1371_vm0, %v1370_v2  ;;  %s1658_s26 = smov (!%p450_p3, %s1353_s26), 1  ;;  %v1279_v6 = vld [vmem:[%s1625_s1 + $0x8] sm:$0xff]   ;;  %v1281_v11 = vld [vmem:[%s1625_s1 + $0x20] sm:$0xff]   ;;  %v1285_v47 = vld [vmem:[#allocation4 + $0x10] sm:$0xff]   ;;  %s1137_s15 = sadd.s32 4294967295, %s1115_s10  ;;  %v727_v57 = vshrl.u32 %v726_v56, 7 }
  0x38   : > { %s1528_s13 = scalar_select %p452_p5, %s1349_s25, 1  ;;  %1174 = vmatpush3.bf16.msra.mxu0 %v1276_v3  ;;  %1182 = vmatpush3.bf16.msra.mxu1 %v1277_v4  ;;  %v1282_v13 = vld [vmem:[%s1625_s1 + $0x28] sm:$0xff]   ;;  %v1134_v26 = vld [vmem:[%s1626_s2] ss:$0 sm:$0xff]  ;;  %v729_v59 = vstv %s1137_s15  ;;  %vm999_vm9 = vcmask 7168  }
  0x39   : > { %s1111_s14 = sshll.u32 %s1658_s26, 2  ;;  %1175 = vmatprep.subr.bf16.mxu0 %v1370_v2  ;;  %1183 = vmatprep.subr.bf16.mxu1 %v1370_v2  ;;  %v1283_v46 = vld [vmem:[#allocation4] sm:$0xff]   ;;  %v1284_v48 = vld [vmem:[#allocation4 + $0x8] sm:$0xff]   ;;  %v1286_v49 = vld [vmem:[#allocation4 + $0x18] sm:$0xff]   ;;  %v728_v58 = vadd.s32 8, %v727_v57  ;;  %v730_v0 = vadd.s32 %v729_v59, %v727_v57  ;;  %s1113_s10 = sshll.u32 %s1658_s26, 1 }
  0x3a   : > { %s1110_s16 = sshll.u32 %s1528_s13, 1  ;;  %v1135_v61 = vld [vmem:[%s1627_s3] ss:$0 sm:$0xff]  ;;  %s464_s15 = sadd.s32 %s1113_s10, %s1528_s13 }
  0x3b   : > { %s456_s17 = sadd.s32 %s1111_s14, %s1110_s16  ;;  %v1136_v63 = vld [vmem:[%s1628_s4] ss:$0 sm:$0xff]  ;;  %v731_v3 = vadd.s32 %v729_v59, %v728_v58  ;;  %vm732_vm3 = vcmp.ge.s32.totalorder %v730_v0, 0  ;;  %vm734_vm4 = vcmp.lt.s32.totalorder %v730_v0, 16  ;;  %s1114_s18 = sshll.u32 %s464_s15, 3 }
  0x3c   : > { %s1112_s23 = sshll.u32 %s456_s17, 2  ;;  %1176 = vmatpush3.bf16.msra.mxu0 %v1278_v5  ;;  %1184 = vmatpush3.bf16.msra.mxu1 %v1279_v6  ;;  %vm736_vm7 = vmand %vm732_vm3, %vm734_vm4  ;;  %v1152_v58 = vld [vmem:[#allocation3] ss:$0 sm:$0xff]  ;;  %s466_s14 = scalar_lea.vmem %s1635_s12, %s1114_s18 }
  0x3d   : > { %s458_s19 = scalar_lea.vmem %s1624_s0, %s1112_s23  ;;  %1189 = vmatprep.subr.bf16.mxu0 %v1370_v2  ;;  %1197 = vmatprep.subr.bf16.mxu1 %v1370_v2  ;;  %vm733_vm5 = vcmp.ge.s32.totalorder %v731_v3, 0  ;;  %vm735_vm6 = vcmp.lt.s32.totalorder %v731_v3, 16 }
  0x3e   : > { %v1280_v7 = vld [vmem:[%s458_s19] sm:$0x3f]   ;;  %vm737_vm8 = vmand %vm733_vm5, %vm735_vm6 }
  0x3f   : > { %v486_v8 = vshrl.u32 %v1280_v7, 16  ;;  %v488_v9 = vshll.u32 %v1280_v7, 16  ;;  %1186 = vmatmul.mubr.msk.bf16.vlgmr.msra.gmra.mrb[0].mxu1 %vm504_vm1, %v1280_v7  ;;  %v609_v14 = vrot.slane %v1280_v7, 1 }
  0x40   : > { %1201 = vmatprep.mubr.msk.bf16.mxu1 %vm1371_vm0, %v1370_v2  ;;  %1198 = vmatpush3.bf16.msra.mxu1 %v1285_v47 }
  0x41   : > { %v490_v10 = vrot.slane %v488_v9, 1  ;;  %1199 = vmatprep.subr.bf16.mxu1 %v1370_v2 }
  0x43   : > { %v491_v12 = vor.u32 %v490_v10, %v486_v8 }
  0x44   : > { %1200 = vmatpush3.bf16.msra.mxu1 %v1286_v49 }
  0x45   : > { %1178 = vmatmul.mubr.msk.bf16.vlgmr.msra.gmra.mrb[0].mxu0 %vm504_vm1, %v491_v12  ;;  %1213 = vmatprep.subr.bf16.mxu1 %v1370_v2 }
  0x46   : > { %1190 = vmatpush3.bf16.msra.mxu0 %v1281_v11  ;;  %1193 = vmatprep.mubr.msk.bf16.mxu0 %vm1371_vm0, %v1370_v2 }
  0x47   : > { %1191 = vmatprep.subr.bf16.mxu0 %v1370_v2 }
  0x4a   : > { %1192 = vmatpush3.bf16.msra.mxu0 %v1282_v13 }
  0x4b   : > { %1205 = vmatprep.subr.bf16.mxu0 %v1370_v2 }
  0x4d   : > { %1194 = vmatmul.mubr.msk.bf16.vlgmr.msra.gmra.mrb[4].mxu0 %vm504_vm1, %v609_v14 }
  0x4e   : > { %1209 = vmatprep.mubr.msk.bf16.mxu0 %vm1371_vm0, %v1370_v2  ;;  %1206 = vmatpush3.bf16.msra.mxu0 %v1283_v46  ;;  %v1148_v46 = vld [vmem:[%s1631_s7] ss:$0 sm:$0xff] }
  0x4f   : > { %1207 = vmatprep.subr.bf16.mxu0 %v1370_v2 }
  0x52   : > { %1208 = vmatpush3.bf16.msra.mxu0 %v1284_v48  ;;  %v1149_v48 = vld [vmem:[%s1632_s8] ss:$0 sm:$0xff] }
 0x112   : > { %v597_v15 = vpop.f32.mrb[0].mxu1 }
 0x113   : > { %v1187_v16 = vpop.f32.mrb[1].mxu1 }
 0x114   : > { %v600_v18 = vpop.f32.mrb[2].mxu1 }
 0x115   : > { %v1188_v21 = vpop.f32.mrb[3].mxu1 }
 0x118   : > { %v542_v17 = vpop.f32.mrb[0].mxu0 }
 0x119   : > { %v598_v19 = vadd.f32 %v597_v15, %v542_v17  ;;  %v1179_v20 = vpop.f32.mrb[1].mxu0  ;;  %v1287_v17 = vld [vmem:[#allocation4 + $0x20] sm:$0xff]  }
 0x11a   : > { %v545_v22 = vpop.f32.mrb[2].mxu0 }
 0x11b   : > { %v601_v23 = vadd.f32 %v600_v18, %v545_v22  ;;  %v1180_v24 = vpop.f32.mrb[3].mxu0 }
 0x120   : > { %v659_v25 = vpop.f32.mrb[4].mxu0 }
 0x121   : > { %v666_v27 = vadd.f32 %v659_v25, %v598_v19  ;;  %v1195_v28 = vpop.f32.mrb[5].mxu0  ;;  %v1288_v19 = vld [vmem:[#allocation4 + $0x28] sm:$0xff]  }
 0x122   : > { %v662_v29 = vpop.f32.mrb[6].mxu0 }
 0x123   : > { %v667_v30 = vadd.f32 %v662_v29, %v601_v23  ;;  %v1196_v31 = vpop.f32.mrb[7].mxu0  ;;  %v675_v32 = vadd.f32 %v1134_v26, %v666_v27 }
 0x124   : > { %v1147_v31 = vld [vmem:[%s1630_s6] ss:$0 sm:$0xff] }
 0x125   : > { %v679_v33 = vsel %vm504_vm1, %v675_v32, 0.0  ;;  %v676_v34 = vadd.f32 %v1134_v26, %v667_v30 }
 0x126   : > { %680 = vadd.xlane.f32.xlu0 %v679_v33 }
 0x127   : > { %v683_v35 = vsel %vm682_vm2, %v676_v34, 0.0 }
 0x12a   : > { %684 = vadd.xlane.f32.xlu0 %v683_v35 }
 0x1b3   : > { %v681_v36 = vpop.xlane.xlu0 %680 }
 0x1b4   : > { %v687_v37 = vmul.f32 0.03125, %v681_v36 }
 0x1b6   : > { %v689_v38 = vsub.f32 %v675_v32, %v687_v37 }
 0x1b7   : > { %v685_v39 = vpop.xlane.xlu0 %684 }
 0x1b8   : > { %v688_v40 = vmul.f32 0.03125, %v685_v39  ;;  %v691_v41 = vmul.f32 %v689_v38, %v689_v38 }
 0x1ba   : > { %v690_v42 = vsub.f32 %v676_v34, %v688_v40  ;;  %v693_v43 = vsel %vm504_vm1, %v691_v41, 0.0 }
 0x1bb   : > { %694 = vadd.xlane.f32.xlu1 %v693_v43 }
 0x1bc   : > { %v692_v44 = vmul.f32 %v690_v42, %v690_v42 }
 0x1be   : > { %v696_v45 = vsel %vm682_vm2, %v692_v44, 0.0 }
 0x1bf   : > { %697 = vadd.xlane.f32.xlu1 %v696_v45 }
 0x248   : > { %v695_v50 = vpop.xlane.xlu1 %694 }
 0x249   : > { %v699_v51 = vmul.f32 0.03125, %v695_v50 }
 0x24b   : > { %v701_v52 = vadd.f32 1e-05, %v699_v51  ;;  %v1150_v51 = vld [vmem:[%s1633_s9] ss:$0 sm:$0xff] }
 0x24c   : > { %v698_v53 = vpop.xlane.xlu1 %697 }
 0x24d   : > { %1289 = vrsqrt.f32 %v701_v52  ;;  %v700_v54 = vmul.f32 0.03125, %v698_v53 }
 0x24f   : > { %v702_v55 = vadd.f32 1e-05, %v700_v54 }
 0x251   : > { %1291 = vrsqrt.f32 %v702_v55  ;;  %v1151_v55 = vld [vmem:[#allocation2] ss:$0 sm:$0xff] }
 0x257   : > { %v1290_v60 = vpop.eup %1289 }
 0x258   : > { %v705_v62 = vmul.f32 %v1290_v60, %v689_v38 }
 0x25a   : > { %v713_v1 = vmul.f32 %v1135_v61, %v705_v62 }
 0x25b   : > { %v1292_v4 = vpop.eup %1291 }
 0x25c   : > { %v706_v5 = vmul.f32 %v1292_v4, %v690_v42  ;;  %v721_v6 = vadd.f32 %v1136_v63, %v713_v1 }
 0x25e   : > { %v714_v7 = vmul.f32 %v1135_v61, %v706_v5  ;;  %v723_v9 = vmax.f32 %v721_v6, 0.0 }
 0x260   : > { %v722_v8 = vadd.f32 %v1136_v63, %v714_v7  ;;  %v742_v11 = vsel %vm736_vm7, %v723_v9, 0.0 }
 0x262   : > { %v724_v10 = vmax.f32 %v722_v8, 0.0 }
 0x264   : > { %v743_v12 = vsel %vm737_vm8, %v724_v10, 0.0 }
 0x265   : > { %v744_v13 = vpack.c.bf16 %v743_v12, %v742_v11 }
 0x267   : > { %1210 = vmatmul.mubr.msk.bf16.vlgmr.msra.gmra.mrb[8].mxu0 %vm504_vm1, %v744_v13  ;;  %v757_v14 = vshll.u32 %v744_v13, 16  ;;  %v755_v15 = vshrl.u32 %v744_v13, 16  ;;  %v876_v20 = vrot.slane %v744_v13, 1 }
 0x269   : > { %v759_v16 = vrot.slane %v757_v14, 1 }
 0x26b   : > { %v760_v18 = vor.u32 %v759_v16, %v755_v15 }
 0x26d   : > { %1202 = vmatmul.mubr.msk.bf16.vlgmr.msra.gmra.mrb[4].mxu1 %vm504_vm1, %v760_v18 }
 0x26e   : > { %1214 = vmatpush3.bf16.msra.mxu1 %v1287_v17  ;;  %1217 = vmatprep.mubr.msk.bf16.mxu1 %vm1371_vm0, %v1370_v2 }
 0x26f   : > { %1215 = vmatprep.subr.bf16.mxu1 %v1370_v2 }
 0x272   : > { %1216 = vmatpush3.bf16.msra.mxu1 %v1288_v19 }
 0x275   : > { %1218 = vmatmul.mubr.msk.bf16.vlgmr.msra.gmra.mrb[8].mxu1 %vm504_vm1, %v876_v20 }
 0x33a   : > { %v864_v21 = vpop.f32.mrb[8].mxu0 }
 0x33b   : > { %v1211_v22 = vpop.f32.mrb[9].mxu0 }
 0x33c   : > { %v867_v23 = vpop.f32.mrb[10].mxu0 }
 0x33d   : > { %v1212_v24 = vpop.f32.mrb[11].mxu0 }
 0x340   : > { %v810_v25 = vpop.f32.mrb[4].mxu1 }
 0x341   : > { %v865_v26 = vadd.f32 %v864_v21, %v810_v25  ;;  %v1203_v27 = vpop.f32.mrb[5].mxu1 }
 0x342   : > { %v813_v28 = vpop.f32.mrb[6].mxu1 }
 0x343   : > { %v1204_v29 = vpop.f32.mrb[7].mxu1 }
 0x348   : > { %v926_v30 = vpop.f32.mrb[8].mxu1 }
 0x349   : > { %v932_v32 = vadd.f32 %v926_v30, %v865_v26  ;;  %v1219_v2 = vpop.f32.mrb[9].mxu1 }
 0x34a   : > { %v929_v33 = vpop.f32.mrb[10].mxu1 }
 0x34b   : > { %v1220_v34 = vpop.f32.mrb[11].mxu1  ;;  %v940_v35 = vadd.f32 %v1147_v31, %v932_v32 }
 0x34d   : > { %v943_v36 = vsel %vm504_vm1, %v940_v35, 0.0 }
 0x34e   : > { %944 = vadd.xlane.f32.xlu0 %v943_v36 }
 0x3db   : > { %v945_v37 = vpop.xlane.xlu0 %944 }
 0x3dc   : > { %v946_v38 = vmul.f32 0.03125, %v945_v37 }
 0x3de   : > { %v947_v39 = vsub.f32 %v940_v35, %v946_v38 }
 0x3e0   : > { %v948_v40 = vmul.f32 %v947_v39, %v947_v39 }
 0x3e2   : > { %v949_v41 = vsel %vm504_vm1, %v948_v40, 0.0 }
 0x3e3   : > { %950 = vadd.xlane.f32.xlu1 %v949_v41 }
 0x470   : > { %v951_v42 = vpop.xlane.xlu1 %950 }
 0x471   : > { %v952_v43 = vmul.f32 0.03125, %v951_v42 }
 0x473   : > { %v953_v44 = vadd.f32 1e-05, %v952_v43 }
 0x475   : > { %1293 = vrsqrt.f32 %v953_v44 }
 0x47f   : > { %v1294_v45 = vpop.eup %1293 }
 0x480   : > { %v955_v47 = vmul.f32 %v1294_v45, %v947_v39 }
 0x482   : > { %v962_v49 = vmul.f32 %v1148_v46, %v955_v47 }
 0x484   : > { %v969_v50 = vadd.f32 %v1149_v48, %v962_v49 }
 0x486   : > { %v970_v52 = vmax.f32 %v969_v50, 0.0 }
 0x488   : > { %v978_v53 = vmul.f32 %v1150_v51, %v970_v52 }
 0x48a   : > { %v979_v54 = vsel %vm504_vm1, %v978_v53, 0.0 }
 0x48b   : > { %980 = vadd.xlane.f32.xlu0 %v979_v54 }
 0x518   : > { %v981_v56 = vpop.xlane.xlu0 %980 }
 0x519   : > { %v989_v57 = vadd.f32 %v1151_v55, %v981_v56 }
 0x51b   : > { %v990_v59 = vmax.f32 %v989_v57, 0.0 }
 0x51d   : > { %v998_v60 = vmul.f32 %v1152_v58, %v990_v59 }
 0x51f   : > { %1000 = vst.msk [vmem:[%s466_s14] sm:$0xff] %vm999_vm9, %v998_v60 }
 0x520 PF: > { %s27_s29 = sadd.s32 1, %s1365_s29   ;;  %s1647_s25 = smov %s1357_s27 }
 0x521   : > { %p24_p7 = scmp.ge.s32.totalorder %s27_s29, 6   ;;  %s1648_s26 = smov %s1361_s28 }
 0x522   : > { %s1649_s27 = smov %s1652_s11  ;;  %s1650_s28 = smov %s1656_s30 }
 0x523   :  { %26 = sbr.rel (!%p24_p7) target bundleno = 6 (0x6), region = 107 }
 0x52a   :  { %1028 = vsyncpa [#allocation5], 1 }
 0x52b   :  { %1030 = vsyncpa [#allocation5 + $0x1], 1 }

</bundles_post_ra>
